<compile_context>
chip_gen: v6e
topology: v6e:2x2x1
jax: 0.10.0
libtpu: 0.0.40
codegen_flags: <defaults>
</compile_context>

<pallas_src>
import functools

import jax
import jax.numpy as jnp
from jax.experimental import pallas as pl
from jax.experimental.pallas import tpu as pltpu


def _las_attn_kernel(q_ref, k_ref, v_ref, o_ref, a_ref=None, *,
                     inv_dk, alpha_c, kernel_size):
    q = q_ref[...]                                  # (G, TQ, D), input dtype
    k = k_ref[...]                                  # (G, S,  D)
    v = v_ref[...]                                  # (G, S,  D)
    tq = q.shape[1]
    S = k.shape[1]

    # attn = (q / d_k) @ k^T, batched over G, f32 accumulation on the MXU.
    # No explicit transpose of K: contract last dims directly.
    q_scaled = q * jnp.asarray(inv_dk, q.dtype)
    attn = jax.lax.dot_general(
        q_scaled, k,
        dimension_numbers=(((2,), (2,)), ((0,), (0,))),
        preferred_element_type=jnp.float32)          # (G, TQ, S) f32

    # eld[i, j] = -alpha_c * (j - i_global) * attn[i, j]
    row0 = pl.program_id(1) * tq
    row = jax.lax.broadcasted_iota(jnp.int32, (1, tq, S), 1) + row0
    col = jax.lax.broadcasted_iota(jnp.int32, (1, tq, S), 2)
    rel = (col - row).astype(jnp.float32) * jnp.float32(-alpha_c)
    eld = attn * rel

    # Row softmax (numerically stable); reciprocal on the EUP.
    m = jnp.max(eld, axis=-1, keepdims=True)
    e = jnp.exp(eld - m)
    p = e * pl.reciprocal(jnp.sum(e, axis=-1, keepdims=True), approx=True)

    # avg_pool1d(kernel_size, stride=1, pad=(ks-1)//2, count_include_pad=True)
    # as shift-and-add along the key/lane axis.  pltpu.roll is circular
    # (jnp.roll semantics), so wrapped lanes are zeroed to emulate zero padding.
    half = (kernel_size - 1) // 2
    acc = p
    for off in range(1, half + 1):
        sr = pltpu.roll(p, off, 2)                   # sr[..., j] = p[..., j - off]
        acc = acc + jnp.where(col >= off, sr, 0.0)
        sl = pltpu.roll(p, S - off, 2)               # sl[..., j] = p[..., j + off]
        acc = acc + jnp.where(col < S - off, sl, 0.0)
    pooled = acc * jnp.float32(1.0 / kernel_size)    # (G, TQ, S) f32

    if a_ref is not None:
        a_ref[...] = pooled.astype(a_ref.dtype)

    # out = pooled @ v, batched over G, operands in v dtype, f32 accumulation.
    out = jax.lax.dot_general(
        pooled.astype(v.dtype), v,
        dimension_numbers=(((2,), (1,)), ((0,), (0,))),
        preferred_element_type=jnp.float32)          # (G, TQ, D)
    o_ref[...] = out.astype(o_ref.dtype)


def _choose_tiles(BH, S):
    """Pick (TQ, G): query tile and number of heads folded per grid step."""
    # Bound the f32 (TQ, S) temporaries (attn/eld/e/p/pooled) to a few MiB so a
    # grid step fits comfortably on every generation (v7x: 64 MiB VMEM,
    # v5e default scoped limit: 16 MiB).
    budget = 6 * 1024 * 1024
    tq_cap = min(256, max(8, (budget // (5 * 4 * max(S, 1))) // 8 * 8))
    if S <= tq_cap or S % 8 != 0:
        tq = S
    else:
        tq = S
        for cand in range(tq_cap, 7, -8):
            if S % cand == 0:
                tq = cand
                break
    # Fold heads when per-head work is tiny (amortizes ~0.35 us/step overhead
    # and sub-vreg masked stores at small S).
    if S >= 128:
        g = 1
    else:
        target = max(1, 256 // S)
        g = 1
        for cand in range(min(BH, target), 0, -1):
            if BH % cand == 0:
                g = cand
                break
    return tq, g


def _vmem_limit_bytes(G, TQ, S, D, itemsize):
    blocks = 2 * itemsize * (G * TQ * D       # q (double-buffered)
                             + 2 * G * S * D  # k, v
                             + G * TQ * D     # out
                             + G * TQ * S)    # smoothed-attn out
    temps = 6 * G * TQ * S * 4                # f32 temporaries
    est = blocks + temps
    return int(min(max(2 * est, 32 * 1024 * 1024), 64 * 1024 * 1024))


def las_attention(q, k, v, *, d_k, alpha_c, kernel_size=3, return_attn=True):
    """Pallas TPU implementation of LaSAttention.forward (mask ignored, as in reference)."""
    assert kernel_size % 2 == 1, "only odd kernel_size supported (see TODO above)"
    B, H, S, D = q.shape
    assert k.shape == (B, H, S, D) and v.shape == (B, H, S, D)
    assert (kernel_size - 1) // 2 < S

    BH = B * H
    qf = q.reshape(BH, S, D)
    kf = k.reshape(BH, S, D)
    vf = v.reshape(BH, S, D)

    TQ, G = _choose_tiles(BH, S)
    grid = (BH // G, S // TQ)

    kernel = functools.partial(
        _las_attn_kernel,
        inv_dk=1.0 / float(d_k),
        alpha_c=float(alpha_c),
        kernel_size=int(kernel_size))

    in_specs = [
        pl.BlockSpec((G, TQ, D), lambda i, t: (i, t, 0)),   # q: query-tiled
        pl.BlockSpec((G, S, D), lambda i, t: (i, 0, 0)),    # k: resident over t
        pl.BlockSpec((G, S, D), lambda i, t: (i, 0, 0)),    # v: resident over t
    ]
    o_spec = pl.BlockSpec((G, TQ, D), lambda i, t: (i, t, 0))
    a_spec = pl.BlockSpec((G, TQ, S), lambda i, t: (i, t, 0))

    if return_attn:
        out_shape = (jax.ShapeDtypeStruct((BH, S, D), q.dtype),
                     jax.ShapeDtypeStruct((BH, S, S), q.dtype))
        out_specs = [o_spec, a_spec]
    else:
        out_shape = jax.ShapeDtypeStruct((BH, S, D), q.dtype)
        out_specs = o_spec

    result = pl.pallas_call(
        kernel,
        out_shape=out_shape,
        grid_spec=pltpu.PrefetchScalarGridSpec(
            num_scalar_prefetch=0,
            grid=grid,
            in_specs=in_specs,
            out_specs=out_specs),
        compiler_params=pltpu.CompilerParams(
            dimension_semantics=("parallel", "parallel"),
            vmem_limit_bytes=_vmem_limit_bytes(G, TQ, S, D, q.dtype.itemsize)),
    )(qf, kf, vf)

    if return_attn:
        out_f, attn_f = result
        return out_f.reshape(B, H, S, D), attn_f.reshape(B, H, S, S)
    return result.reshape(B, H, S, D)


def _reference(q, k, v, *, d_k, alpha_c, kernel_size):
    """Pure-JAX reference mirroring the PyTorch forward (odd kernel_size)."""
    S = q.shape[2]
    attn = jnp.einsum("bhsd,bhtd->bhst", q / d_k, k)
    d_l = jnp.arange(S)[None, :] - jnp.arange(S)[:, None]          # col - row
    eld = ((-alpha_c) * d_l).astype(attn.dtype) * attn
    p = jax.nn.softmax(eld, axis=-1)
    half = (kernel_size - 1) // 2
    pp = jnp.pad(p, ((0, 0), (0, 0), (0, 0), (half, half)))
    pooled = sum(pp[..., o:o + S] for o in range(kernel_size)) / kernel_size
    out = jnp.einsum("bhst,bhtd->bhsd", pooled, v)
    return out, pooled


if __name__ == "__main__":
    key = jax.random.PRNGKey(0)

    def run_case(B, H, S, D, kernel_size=3, alpha_c=0.1, tol=5e-3, check_out_only=False):
        d_k = float(D) ** 0.5
        kq, kk, kv = jax.random.split(jax.random.fold_in(key, S), 3)
        q = jax.random.normal(kq, (B, H, S, D), dtype=jnp.float32)
        k = jax.random.normal(kk, (B, H, S, D), dtype=jnp.float32)
        v = jax.random.normal(kv, (B, H, S, D), dtype=jnp.float32)

        out, attn = las_attention(q, k, v, d_k=d_k, alpha_c=alpha_c,
                                  kernel_size=kernel_size)
        jax.block_until_ready(out)
        jax.block_until_ready(attn)

        ref_out, ref_attn = _reference(q, k, v, d_k=d_k, alpha_c=alpha_c,
                                       kernel_size=kernel_size)
        assert out.shape == (B, H, S, D) and attn.shape == (B, H, S, S)
        # Tolerance loosened vs exact math because of approx softmax reciprocal.
        assert jnp.allclose(out, ref_out, atol=tol, rtol=tol), \
            float(jnp.max(jnp.abs(out - ref_out)))
        assert jnp.allclose(attn, ref_attn, atol=tol, rtol=tol), \
            float(jnp.max(jnp.abs(attn - ref_attn)))

        if check_out_only:
            out_only = las_attention(q, k, v, d_k=d_k, alpha_c=alpha_c,
                                     kernel_size=kernel_size, return_attn=False)
            jax.block_until_ready(out_only)
            assert jnp.allclose(out_only, out, atol=1e-5, rtol=1e-5)

    # Small shape matching the module's per-head layout (grouped-heads path).
    run_case(B=2, H=4, S=8, D=32, tol=5e-3, check_out_only=True)
    # Larger sequence exercising the query-tiled path (TQ=256, 2 tiles/head).
    run_case(B=1, H=2, S=512, D=32, tol=1e-2)

    print("KERNEL_OK")
</pallas_src>

<mosaic_0001>
module attributes {stable_mosaic.version = 11 : i64} {
  func.func @_las_attn_kernel(%arg0: i32, %arg1: i32, %arg2: memref<8x8x32xf32, #tpu.memory_space<vmem>>, %arg3: memref<8x8x32xf32, #tpu.memory_space<vmem>>, %arg4: memref<8x8x32xf32, #tpu.memory_space<vmem>>, %arg5: memref<8x8x32xf32, #tpu.memory_space<vmem>>, %arg6: memref<8x8x8xf32, #tpu.memory_space<vmem>>) attributes {dimension_semantics = [#tpu.dimension_semantics<parallel>, #tpu.dimension_semantics<parallel>], iteration_bounds = array<i64: 1, 1>, scalar_prefetch = 0 : i64, scratch_operands = 0 : i64, tpu.core_type = #tpu.core_type<tc>, window_params = [{transform_indices = @transform_0, window_bounds = array<i64: 8, 8, 32>}, {transform_indices = @transform_1, window_bounds = array<i64: 8, 8, 32>}, {transform_indices = @transform_2, window_bounds = array<i64: 8, 8, 32>}, {transform_indices = @transform_3, window_bounds = array<i64: 8, 8, 32>}, {transform_indices = @transform_4, window_bounds = array<i64: 8, 8, 8>}]} {
    %c0 = arith.constant 0 : index
    %c0_0 = arith.constant 0 : index
    %c0_1 = arith.constant 0 : index
    %0 = vector.load %arg2[%c0, %c0_0, %c0_1] : memref<8x8x32xf32, #tpu.memory_space<vmem>>, vector<8x8x32xf32>
    %c0_2 = arith.constant 0 : index
    %c0_3 = arith.constant 0 : index
    %c0_4 = arith.constant 0 : index
    %1 = vector.load %arg3[%c0_2, %c0_3, %c0_4] : memref<8x8x32xf32, #tpu.memory_space<vmem>>, vector<8x8x32xf32>
    %c0_5 = arith.constant 0 : index
    %c0_6 = arith.constant 0 : index
    %c0_7 = arith.constant 0 : index
    %2 = vector.load %arg4[%c0_5, %c0_6, %c0_7] : memref<8x8x32xf32, #tpu.memory_space<vmem>>, vector<8x8x32xf32>
    %cst = arith.constant 0.176776692 : f32
    %3 = vector.broadcast %cst : f32 to vector<8x8x32xf32>
    %4 = arith.mulf %0, %3 : vector<8x8x32xf32>
    %cst_8 = arith.constant dense<0.000000e+00> : vector<8x8x8xf32>
    %5 = tpu.matmul %4, %1, %cst_8 {dimension_numbers = #tpu.dot_dimension_numbers<[2], [2], [1], [1], [0, 0, 0, 1, 1, 1], [0], [0]>} : vector<8x8x32xf32>, vector<8x8x32xf32>, vector<8x8x8xf32> -> vector<8x8x8xf32>
    %c8_i32 = arith.constant 8 : i32
    %6 = arith.muli %arg1, %c8_i32 : i32
    %7 = tpu.iota {dimensions = array<i32: 1>} : vector<1x8x8xi32>
    %8 = vector.broadcast %6 : i32 to vector<1x8x8xi32>
    %9 = arith.addi %7, %8 : vector<1x8x8xi32>
    %10 = tpu.iota {dimensions = array<i32: 2>} : vector<1x8x8xi32>
    %11 = arith.subi %10, %9 : vector<1x8x8xi32>
    %12 = arith.sitofp %11 : vector<1x8x8xi32> to vector<1x8x8xf32>
    %cst_9 = arith.constant -1.000000e-01 : f32
    %13 = vector.broadcast %cst_9 : f32 to vector<1x8x8xf32>
    %14 = arith.mulf %12, %13 : vector<1x8x8xf32>
    %15 = vector.broadcast %14 : vector<1x8x8xf32> to vector<8x8x8xf32>
    %16 = arith.mulf %5, %15 : vector<8x8x8xf32>
    %cst_10 = arith.constant dense<0xFF800000> : vector<8x8xf32>
    %17 = vector.multi_reduction <maximumf>, %16, %cst_10 [2] : vector<8x8x8xf32> to vector<8x8xf32>
    %18 = vector.shape_cast %17 : vector<8x8xf32> to vector<8x8x1xf32>
    %19 = vector.broadcast %18 : vector<8x8x1xf32> to vector<8x8x8xf32>
    %20 = arith.subf %16, %19 : vector<8x8x8xf32>
    %21 = math.exp %20 : vector<8x8x8xf32>
    %cst_11 = arith.constant dense<0.000000e+00> : vector<8x8xf32>
    %22 = vector.multi_reduction <add>, %21, %cst_11 [2] : vector<8x8x8xf32> to vector<8x8xf32>
    %23 = vector.shape_cast %22 : vector<8x8xf32> to vector<8x8x1xf32>
    %24 = tpu.reciprocal %23 {approx = true} : vector<8x8x1xf32> -> vector<8x8x1xf32>
    %25 = vector.broadcast %24 : vector<8x8x1xf32> to vector<8x8x8xf32>
    %26 = arith.mulf %21, %25 : vector<8x8x8xf32>
    %c1_i32 = arith.constant 1 : i32
    %27 = tpu.dynamic_rotate %26 by %c1_i32 dim 2 : vector<8x8x8xf32>, i32 -> vector<8x8x8xf32>
    %c1_i32_12 = arith.constant 1 : i32
    %28 = vector.broadcast %c1_i32_12 : i32 to vector<1x8x8xi32>
    %29 = arith.cmpi sge, %10, %28 : vector<1x8x8xi32>
    %cst_13 = arith.constant 0.000000e+00 : f32
    %30 = vector.shape_cast %29 : vector<1x8x8xi1> to vector<1x8x8xi1>
    %31 = vector.broadcast %30 : vector<1x8x8xi1> to vector<8x8x8xi1>
    %32 = vector.broadcast %cst_13 : f32 to vector<8x8x8xf32>
    %33 = arith.select %31, %27, %32 : vector<8x8x8xi1>, vector<8x8x8xf32>
    %34 = arith.addf %26, %33 : vector<8x8x8xf32>
    %c7_i32 = arith.constant 7 : i32
    %35 = tpu.dynamic_rotate %26 by %c7_i32 dim 2 : vector<8x8x8xf32>, i32 -> vector<8x8x8xf32>
    %c7_i32_14 = arith.constant 7 : i32
    %36 = vector.broadcast %c7_i32_14 : i32 to vector<1x8x8xi32>
    %37 = arith.cmpi slt, %10, %36 : vector<1x8x8xi32>
    %cst_15 = arith.constant 0.000000e+00 : f32
    %38 = vector.shape_cast %37 : vector<1x8x8xi1> to vector<1x8x8xi1>
    %39 = vector.broadcast %38 : vector<1x8x8xi1> to vector<8x8x8xi1>
    %40 = vector.broadcast %cst_15 : f32 to vector<8x8x8xf32>
    %41 = arith.select %39, %35, %40 : vector<8x8x8xi1>, vector<8x8x8xf32>
    %42 = arith.addf %34, %41 : vector<8x8x8xf32>
    %cst_16 = arith.constant 0.333333343 : f32
    %43 = vector.broadcast %cst_16 : f32 to vector<8x8x8xf32>
    %44 = arith.mulf %42, %43 : vector<8x8x8xf32>
    %c0_17 = arith.constant 0 : index
    %c0_18 = arith.constant 0 : index
    %c0_19 = arith.constant 0 : index
    %45 = vector.load %arg6[%c0_17, %c0_18, %c0_19] : memref<8x8x8xf32, #tpu.memory_space<vmem>>, vector<8x8x8xf32>
    tpu.vector_store %arg6[%c0_17, %c0_18, %c0_19], %44 {strides = array<i32>} : memref<8x8x8xf32, #tpu.memory_space<vmem>>, vector<8x8x8xf32>,
    %cst_20 = arith.constant dense<0.000000e+00> : vector<8x8x32xf32>
    %46 = tpu.matmul %44, %2, %cst_20 {dimension_numbers = #tpu.dot_dimension_numbers<[2], [1], [1], [2], [0, 0, 0, 1, 1, 2], [0], [0]>} : vector<8x8x8xf32>, vector<8x8x32xf32>, vector<8x8x32xf32> -> vector<8x8x32xf32>
    %c0_21 = arith.constant 0 : index
    %c0_22 = arith.constant 0 : index
    %c0_23 = arith.constant 0 : index
    %47 = vector.load %arg5[%c0_21, %c0_22, %c0_23] : memref<8x8x32xf32, #tpu.memory_space<vmem>>, vector<8x8x32xf32>
    tpu.vector_store %arg5[%c0_21, %c0_22, %c0_23], %46 {strides = array<i32>} : memref<8x8x32xf32, #tpu.memory_space<vmem>>, vector<8x8x32xf32>,
    return
  }
  func.func @transform_0(%arg0: i32, %arg1: i32) -> (i32, i32, i32) {
    %c0_i32 = arith.constant 0 : i32
    %c0_i32_0 = arith.constant 0 : i32
    return %arg0, %arg1, %c0_i32 : i32, i32, i32
  }
  func.func @transform_1(%arg0: i32, %arg1: i32) -> (i32, i32, i32) {
    %c0_i32 = arith.constant 0 : i32
    %c0_i32_0 = arith.constant 0 : i32
    %c0_i32_1 = arith.constant 0 : i32
    return %arg0, %c0_i32, %c0_i32_0 : i32, i32, i32
  }
  func.func @transform_2(%arg0: i32, %arg1: i32) -> (i32, i32, i32) {
    %c0_i32 = arith.constant 0 : i32
    %c0_i32_0 = arith.constant 0 : i32
    %c0_i32_1 = arith.constant 0 : i32
    return %arg0, %c0_i32, %c0_i32_0 : i32, i32, i32
  }
  func.func @transform_3(%arg0: i32, %arg1: i32) -> (i32, i32, i32) {
    %c0_i32 = arith.constant 0 : i32
    %c0_i32_0 = arith.constant 0 : i32
    return %arg0, %arg1, %c0_i32 : i32, i32, i32
  }
  func.func @transform_4(%arg0: i32, %arg1: i32) -> (i32, i32, i32) {
    %c0_i32 = arith.constant 0 : i32
    %c0_i32_0 = arith.constant 0 : i32
    return %arg0, %arg1, %c0_i32 : i32, i32, i32
  }
}

</mosaic_0001>

<bundles_post_ra>
// kernel: tpu_custom_call.1
= control target key start
LH: loop header
LB: loop body
LE: loop exit
PB: predicated region body
PF: predicated region fallthrough
CT: control target
= control target key end

     0   :  { %10 = vsyncpa [#allocation3], 0  ;;  %s2174_s0 = inlined_call_operand.hbm [shape: f32[8,8,32], index: 0, kind: input, shape index: {}]   ;;  %s2175_s1 = inlined_call_operand.hbm [shape: f32[8,8,32], index: 1, kind: input, shape index: {}]   ;;  %s2176_s2 = inlined_call_operand.hbm [shape: f32[8,8,32], index: 2, kind: input, shape index: {}]   ;;  %s2177_s3 = inlined_call_operand.hbm [shape: f32[8,8,32], index: 3, kind: output, shape index: {0}]   ;;  %s2178_s4 = inlined_call_operand.hbm [shape: f32[8,8,8], index: 4, kind: output, shape index: {1}]  }
   0x1   :  { %11 = vsyncpa [#allocation6], 0 }
   0x2   :  { %12 = vsyncpa [#allocation4], 0 }
   0x3   :  { %13 = vsyncpa [#allocation10], 0  ;;  %s1879_s15 = smov [#allocation5]   ;;  %s1880_s17 = smov [#allocation2]  }
   0x4   :  { %s31_s16 = sshll.u32 %s1879_s15, 4  ;;  %s19_s18 = sshll.u32 %s1880_s17, 4  ;;  %s32_s16 = int_to_ptr.vmem [resolvable:$true] %s31_s16  ;;  %s20_s18 = int_to_ptr.vmem [resolvable:$true] %s19_s18 }
   0x5   :  { %s1779_s19 = scalar_lea.vmem %s32_s16, 1024  ;;  %p1784_p1 = scmp.lt.s32.totalorder %s32_s16, %s32_s16 }
   0x6   :  { %p1780_p0 = scmp.ne.s32.totalorder %s32_s16, %s1779_s19  ;;  %p1785_p2 = scmp.lt.s32.totalorder %s1779_s19, %s1779_s19 }
   0x8   :  { %p1786_p3 = por %p1785_p2, %p1784_p1 }
   0xa   :  { %p1787_p4 = pnand %p1786_p3, %p1780_p0 }
   0xc   :  { %1790 = shalt.err (!%p1787_p4)
}
   0xd   :  { %s1881_s20 = smov 128   ;;  %s1882_s21 = smov 8  }
   0xe   :  { %37 = dma.hbm_to_vmem [thread:$0]  %s2175_s1, 1024, %s32_s16, [#allocation6], %s1881_s20, %s1881_s20, %s1882_s21  }
   0xf   :  { %s1799_s24 = scalar_lea.vmem %s20_s18, 1024  ;;  %p1804_p6 = scmp.lt.s32.totalorder %s20_s18, %s20_s18 }
  0x10   :  { %p1800_p5 = scmp.ne.s32.totalorder %s20_s18, %s1799_s24  ;;  %p1805_p7 = scmp.lt.s32.totalorder %s1799_s24, %s1799_s24 }
  0x12   :  { %p1806_p8 = por %p1805_p7, %p1804_p6 }
  0x14   :  { %p1807_p9 = pnand %p1806_p8, %p1800_p5 }
  0x16   :  { %1810 = shalt.err (!%p1807_p9)
}
  0x17   :  { %25 = dma.hbm_to_vmem [thread:$0]  %s2174_s0, 1024, %s20_s18, [#allocation3], %s1881_s20, %s1881_s20, %s1882_s21  }
  0x18   :  { %s1883_s27 = smov [#allocation7]  }
  0x19   :  { %s43_s28 = sshll.u32 %s1883_s27, 4  ;;  %s44_s28 = int_to_ptr.vmem [resolvable:$true] %s43_s28 }
  0x1a   :  { %s1819_s29 = scalar_lea.vmem %s44_s28, 1024  ;;  %p1824_p11 = scmp.lt.s32.totalorder %s44_s28, %s44_s28 }
  0x1b   :  { %p1820_p10 = scmp.ne.s32.totalorder %s44_s28, %s1819_s29  ;;  %p1825_p12 = scmp.lt.s32.totalorder %s1819_s29, %s1819_s29 }
  0x1d   :  { %p1826_p13 = por %p1825_p12, %p1824_p11 }
  0x1f   :  { %p1827_p0 = pnand %p1826_p13, %p1820_p10 }
  0x21   :  { %1830 = shalt.err (!%p1827_p0)
}
  0x22   :  { %49 = dma.hbm_to_vmem [thread:$0]  %s2176_s2, 1024, %s44_s28, [#allocation6], %s1881_s20, %s1881_s20, %s1882_s21  }
  0x23   :  { %1871 = dma.done.wait [#allocation3], 1024  }
  0x24   :  { %1872 = vsyncadd [#allocation3], 4294966272 }
  0x25   :  { %1873 = dma.done.wait [#allocation6], 2048  }
  0x26   :  { %1874 = vsyncadd [#allocation6], 4294965248  ;;  %v1884_v0 = vmov 0.0   ;;  %vm1885_vm0 = vmmov 0   ;;  %vm91_vm1 = vcmask 261120   ;;  %v67_v1 = vld [vmem:[#allocation5] sm:$0xff]  ;;  %v701_v25 = vlaneseq }
  0x27   :  { %1648 = vmatprep.subr.mxu0 %v1884_v0  ;;  %1653 = vmatprep.subr.mxu1 %v1884_v0  ;;  %v68_v2 = vld [vmem:[#allocation5 + $0x8] sm:$0xff]  ;;  %v59_v3 = vld [vmem:[#allocation2] sm:$0xff]  ;;  %v61_v6 = vld [vmem:[#allocation2 + $0x10] sm:$0xff]  ;;  %vm718_vm2 = vcmask 64512   ;;  %vm807_vm3 = vcmask 1047616   ;;  %s1886_s0 = smov 121  }
  0x28   :  { %1650 = vmatprep.mubr.msk.f32.mxu0 %vm1885_vm0, %v1884_v0  ;;  %1655 = vmatprep.mubr.msk.f32.mxu1 %vm1885_vm0, %v1884_v0  ;;  %v83_v4 = vmul.f32 0.17677669, %v59_v3  ;;  %v60_v5 = vld [vmem:[#allocation2 + $0x8] sm:$0xff]  ;;  %v69_v7 = vld [vmem:[#allocation5 + $0x10] sm:$0xff]  ;;  %v70_v9 = vld [vmem:[#allocation5 + $0x18] sm:$0xff]  ;;  %v702_v26 = vshrl.u32 %v701_v25, 7 }
  0x29   :  { %1649 = vmatpush3.xpose.msk.msra.mxu0 %vm91_vm1, %v67_v1  ;;  %1654 = vmatpush3.xpose.msk.msra.mxu1 %vm91_vm1, %v68_v2  ;;  %v84_v8 = vmul.f32 0.17677669, %v60_v5  ;;  %v62_v10 = vld [vmem:[#allocation2 + $0x18] sm:$0xff]  ;;  %v85_v11 = vmul.f32 0.17677669, %v61_v6  ;;  %v63_v12 = vld [vmem:[#allocation2 + $0x20] sm:$0xff] }
  0x2a   :  { %1658 = vmatprep.subr.mxu0 %v1884_v0  ;;  %1663 = vmatprep.subr.mxu1 %v1884_v0  ;;  %v71_v13 = vld [vmem:[#allocation5 + $0x20] sm:$0xff]  ;;  %v86_v14 = vmul.f32 0.17677669, %v62_v10  ;;  %v64_v15 = vld [vmem:[#allocation2 + $0x28] sm:$0xff]  ;;  %v87_v16 = vmul.f32 0.17677669, %v63_v12 }
  0x2b   :  { %v72_v17 = vld [vmem:[#allocation5 + $0x28] sm:$0xff]  ;;  %v65_v18 = vld [vmem:[#allocation2 + $0x30] sm:$0xff]  ;;  %v88_v20 = vmul.f32 0.17677669, %v64_v15  ;;  %v66_v21 = vld [vmem:[#allocation2 + $0x38] sm:$0xff]  ;;  %v1979_v27 = vand.u32 127, %v701_v25 }
  0x2c   :  { %1651 = vmatmul.mubr.msk.f32.vlgmr.msra.gmra.mxu0 %vm91_vm1, %v83_v4  ;;  %1656 = vmatmul.mubr.msk.f32.vlgmr.msra.gmra.mxu1 %vm91_vm1, %v84_v8  ;;  %v73_v19 = vld [vmem:[#allocation5 + $0x30] sm:$0xff]  ;;  %v89_v22 = vmul.f32 0.17677669, %v65_v18  ;;  %v74_v23 = vld [vmem:[#allocation5 + $0x38] sm:$0xff]  ;;  %v90_v24 = vmul.f32 0.17677669, %v66_v21 }
  0x2d   :  { %1659 = vmatpush3.xpose.msk.msra.mxu0 %vm91_vm1, %v69_v7  ;;  %1660 = vmatprep.mubr.msk.f32.mxu0 %vm1885_vm0, %v1884_v0  ;;  %v707_v28 = vsub.s32 %v1979_v27, %v702_v26  ;;  %s1887_s2 = smov 127   ;;  %vm856_vm4 = vcmp.ge.s32.totalorder %v1979_v27, 1  ;;  %vm907_vm5 = vcmp.lt.s32.totalorder %v1979_v27, 7  ;;  %s1888_s5 = smov [#allocation9]  }
  0x2e   :  { %1668 = vmatprep.subr.mxu0 %v1884_v0  ;;  %1664 = vmatpush3.xpose.msk.msra.mxu1 %vm91_vm1, %v70_v9  ;;  %s1575_s6 = sshll.u32 %s1888_s5, 4  ;;  %s1576_s6 = int_to_ptr.vmem [resolvable:$true] %s1575_s6 }
  0x2f   :  { %1665 = vmatprep.mubr.msk.f32.mxu1 %vm1885_vm0, %v1884_v0  ;;  %1673 = vmatprep.subr.mxu1 %v1884_v0  ;;  %v708_v29 = vcvt.s32.f32 %v707_v28  ;;  %s1831_s7 = scalar_lea.vmem %s1576_s6, 1024  ;;  %p1836_p2 = scmp.lt.s32.totalorder %s1576_s6, %s1576_s6 }
  0x30   :  { %1661 = vmatmul.mubr.msk.f32.vlgmr.msra.gmra.mxu0 %vm91_vm1, %v85_v11  ;;  %p1832_p1 = scmp.ne.s32.totalorder %s1576_s6, %s1831_s7  ;;  %p1837_p3 = scmp.lt.s32.totalorder %s1831_s7, %s1831_s7 }
  0x31   :  { %1669 = vmatpush3.xpose.msk.msra.mxu0 %vm91_vm1, %v71_v13  ;;  %1670 = vmatprep.mubr.msk.f32.mxu0 %vm1885_vm0, %v1884_v0  ;;  %v709_v30 = vmul.f32 -0.1, %v708_v29 }
  0x32   :  { %1666 = vmatmul.mubr.msk.f32.vlgmr.msra.gmra.mxu1 %vm91_vm1, %v86_v14  ;;  %1678 = vmatprep.subr.mxu0 %v1884_v0  ;;  %p1838_p4 = por %p1837_p3, %p1836_p2 }
  0x33   :  { %1674 = vmatpush3.xpose.msk.msra.mxu1 %vm91_vm1, %v72_v17  ;;  %1675 = vmatprep.mubr.msk.f32.mxu1 %vm1885_vm0, %v1884_v0 }
  0x34   :  { %1671 = vmatmul.mubr.msk.f32.vlgmr.msra.gmra.mxu0 %vm91_vm1, %v87_v16  ;;  %1683 = vmatprep.subr.mxu1 %v1884_v0  ;;  %p1839_p5 = pnand %p1838_p4, %p1832_p1 }
  0x35   :  { %1679 = vmatpush3.xpose.msk.msra.mxu0 %vm91_vm1, %v73_v19  ;;  %1680 = vmatprep.mubr.msk.f32.mxu0 %vm1885_vm0, %v1884_v0 }
  0x36   :  { %1676 = vmatmul.mubr.msk.f32.vlgmr.msra.gmra.mxu1 %vm91_vm1, %v88_v20  ;;  %1688 = vmatprep.subr.mxu0 %v1884_v0 }
  0x37   :  { %1684 = vmatpush3.xpose.msk.msra.mxu1 %vm91_vm1, %v74_v23  ;;  %1685 = vmatprep.mubr.msk.f32.mxu1 %vm1885_vm0, %v1884_v0 }
  0x38   :  { %1681 = vmatmul.mubr.msk.f32.vlgmr.msra.gmra.mxu0 %vm91_vm1, %v89_v22  ;;  %1693 = vmatprep.subr.mxu1 %v1884_v0 }
  0x39   :  { %1690 = vmatprep.mubr.msk.f32.mxu0 %vm1885_vm0, %v1884_v0 }
  0x3a   :  { %1686 = vmatmul.mubr.msk.f32.vlgmr.msra.gmra.mxu1 %vm91_vm1, %v90_v24 }
  0x3b   :  { %1695 = vmatprep.mubr.msk.f32.mxu1 %vm1885_vm0, %v1884_v0 }
  0xec   :  { %v164_v31 = vpop.f32.mrf.mxu0  ;;  %v240_v32 = vpop.f32.mrf.mxu1 }
  0xed   :  { %v710_v33 = vmul.f32 %v709_v30, %v164_v31  ;;  %v711_v34 = vmul.f32 %v709_v30, %v240_v32 }
  0xee   :  { %v1652_v35 = vpop.f32.mrf.mxu0  ;;  %v1657_v36 = vpop.f32.mrf.mxu1 }
  0xef   :  { %v719_v37 = vsel %vm718_vm2, %v710_v33, -inf  ;;  %v722_v40 = vsel %vm718_vm2, %v711_v34, -inf }
  0xf0   :  { %720 = vmax.xlane.f32.xlu0 %v719_v37  ;;  %v316_v38 = vpop.f32.mrf.mxu0 }
  0xf1   :  { %v712_v39 = vmul.f32 %v709_v30, %v316_v38 }
  0xf2   :  { %v1662_v41 = vpop.f32.mrf.mxu0  ;;  %v392_v42 = vpop.f32.mrf.mxu1 }
  0xf3   :  { %v713_v43 = vmul.f32 %v709_v30, %v392_v42  ;;  %v725_v44 = vsel %vm718_vm2, %v712_v39, -inf }
  0xf4   :  { %723 = vmax.xlane.f32.xlu0 %v722_v40  ;;  %726 = vmax.xlane.f32.xlu1 %v725_v44  ;;  %v468_v45 = vpop.f32.mrf.mxu0  ;;  %v1667_v46 = vpop.f32.mrf.mxu1 }
  0xf5   :  { %v714_v47 = vmul.f32 %v709_v30, %v468_v45  ;;  %v728_v48 = vsel %vm718_vm2, %v713_v43, -inf }
  0xf6   :  { %v1672_v49 = vpop.f32.mrf.mxu0  ;;  %v544_v50 = vpop.f32.mrf.mxu1 }
  0xf7   :  { %v715_v51 = vmul.f32 %v709_v30, %v544_v50  ;;  %v731_v52 = vsel %vm718_vm2, %v714_v47, -inf }
  0xf8   :  { %729 = vmax.xlane.f32.xlu1 %v728_v48  ;;  %732 = vmax.xlane.f32.xlu0 %v731_v52  ;;  %v620_v53 = vpop.f32.mrf.mxu0  ;;  %v1677_v54 = vpop.f32.mrf.mxu1 }
  0xf9   :  { %v716_v55 = vmul.f32 %v709_v30, %v620_v53  ;;  %v734_v56 = vsel %vm718_vm2, %v715_v51, -inf }
  0xfa   :  { %v696_v57 = vpop.f32.mrf.mxu1  ;;  %v1682_v58 = vpop.f32.mrf.mxu0 }
  0xfb   :  { %v717_v59 = vmul.f32 %v709_v30, %v696_v57  ;;  %v737_v60 = vsel %vm718_vm2, %v716_v55, -inf }
  0xfc   :  { %735 = vmax.xlane.f32.xlu1 %v734_v56  ;;  %738 = vmax.xlane.f32.xlu0 %v737_v60  ;;  %v1687_v61 = vpop.f32.mrf.mxu1 }
  0xfd   :  { %v740_v62 = vsel %vm718_vm2, %v717_v59, -inf }
 0x100   :  { %741 = vmax.xlane.f32.xlu1 %v740_v62 }
 0x179   :  { %v721_v63 = vpop.xlane.xlu0 %720 }
 0x17a   :  { %v743_v1 = vsub.f32 %v710_v33, %v721_v63 }
 0x17c   :  { %v751_v2 = vmul.f32 1.442695, %v743_v1 }
 0x17d   :  { %v724_v3 = vpop.xlane.xlu0 %723  ;;  %v727_v4 = vpop.xlane.xlu1 %726 }
 0x17e   :  { %1739 = vpow2.f32 %v751_v2  ;;  %v744_v5 = vsub.f32 %v711_v34, %v724_v3  ;;  %v745_v6 = vsub.f32 %v712_v39, %v727_v4 }
 0x180   :  { %v753_v7 = vmul.f32 1.442695, %v744_v5  ;;  %v755_v8 = vmul.f32 1.442695, %v745_v6 }
 0x181   :  { %v730_v9 = vpop.xlane.xlu1 %729  ;;  %v733_v10 = vpop.xlane.xlu0 %732 }
 0x182   :  { %1741 = vpow2.f32 %v753_v7  ;;  %v746_v11 = vsub.f32 %v713_v43, %v730_v9  ;;  %v747_v12 = vsub.f32 %v714_v47, %v733_v10 }
 0x183   :  { %1743 = vpow2.f32 %v755_v8 }
 0x184   :  { %v757_v13 = vmul.f32 1.442695, %v746_v11  ;;  %v759_v14 = vmul.f32 1.442695, %v747_v12 }
 0x185   :  { %v736_v15 = vpop.xlane.xlu1 %735  ;;  %v739_v16 = vpop.xlane.xlu0 %738 }
 0x186   :  { %1745 = vpow2.f32 %v757_v13  ;;  %v748_v17 = vsub.f32 %v715_v51, %v736_v15  ;;  %v749_v18 = vsub.f32 %v716_v55, %v739_v16 }
 0x187   :  { %1747 = vpow2.f32 %v759_v14 }
 0x188   :  { %v761_v19 = vmul.f32 1.442695, %v748_v17  ;;  %v763_v20 = vmul.f32 1.442695, %v749_v18  ;;  %v75_v18 = vld [vmem:[#allocation7] sm:$0xff] }
 0x189   :  { %v742_v21 = vpop.xlane.xlu1 %741  ;;  %1689 = vmatpush3.msra.mxu0 %v75_v18 }
 0x18a   :  { %1749 = vpow2.f32 %v761_v19  ;;  %v750_v22 = vsub.f32 %v717_v59, %v742_v21  ;;  %1698 = vmatprep.subr.mxu0 %v1884_v0  ;;  %v76_v21 = vld [vmem:[#allocation7 + $0x8] sm:$0xff] }
 0x18b   :  { %v1740_v23 = vpop.eup %1739  ;;  %1751 = vpow2.f32 %v763_v20  ;;  %1694 = vmatpush3.msra.mxu1 %v76_v21  ;;  %v81_v21 = vld [vmem:[#allocation7 + $0x30] sm:$0xff] }
 0x18c   :  { %v765_v24 = vmul.f32 1.442695, %v750_v22  ;;  %v767_v25 = vsel %vm718_vm2, %v1740_v23, 0.0  ;;  %1703 = vmatprep.subr.mxu1 %v1884_v0 }
 0x18d   :  { %768 = vadd.xlane.f32.xlu0 %v767_v25 }
 0x18e   :  { %1753 = vpow2.f32 %v765_v24 }
 0x18f   :  { %v1742_v26 = vpop.eup %1741 }
 0x190   :  { %v1744_v28 = vpop.eup %1743  ;;  %v770_v29 = vsel %vm718_vm2, %v1742_v26, 0.0 }
 0x191   :  { %771 = vadd.xlane.f32.xlu1 %v770_v29  ;;  %v773_v30 = vsel %vm718_vm2, %v1744_v28, 0.0 }
 0x192   :  { %774 = vadd.xlane.f32.xlu0 %v773_v30 }
 0x193   :  { %v1746_v31 = vpop.eup %1745 }
 0x194   :  { %v1748_v32 = vpop.eup %1747  ;;  %v776_v33 = vsel %vm718_vm2, %v1746_v31, 0.0 }
 0x195   :  { %777 = vadd.xlane.f32.xlu1 %v776_v33  ;;  %v779_v34 = vsel %vm718_vm2, %v1748_v32, 0.0 }
 0x196   :  { %780 = vadd.xlane.f32.xlu0 %v779_v34 }
 0x197   :  { %v1750_v35 = vpop.eup %1749 }
 0x198   :  { %v1752_v36 = vpop.eup %1751  ;;  %v782_v37 = vsel %vm718_vm2, %v1750_v35, 0.0 }
 0x199   :  { %783 = vadd.xlane.f32.xlu1 %v782_v37  ;;  %v785_v38 = vsel %vm718_vm2, %v1752_v36, 0.0 }
 0x19a   :  { %786 = vadd.xlane.f32.xlu0 %v785_v38 }
 0x19b   :  { %v1754_v39 = vpop.eup %1753 }
 0x19c   :  { %v788_v40 = vsel %vm718_vm2, %v1754_v39, 0.0 }
 0x19d   :  { %789 = vadd.xlane.f32.xlu1 %v788_v40 }
 0x216   :  { %v769_v41 = vpop.xlane.xlu0 %768 }
 0x217   :  { %1755 = vrcp.f32 %v769_v41 }
 0x21a   :  { %v772_v42 = vpop.xlane.xlu1 %771 }
 0x21b   :  { %1757 = vrcp.f32 %v772_v42  ;;  %v775_v43 = vpop.xlane.xlu0 %774 }
 0x21c   :  { %1759 = vrcp.f32 %v775_v43 }
 0x21e   :  { %v778_v44 = vpop.xlane.xlu1 %777 }
 0x21f   :  { %v781_v45 = vpop.xlane.xlu0 %780 }
 0x220   :  { %1761 = vrcp.f32 %v781_v45 }
 0x221   :  { %1763 = vrcp.f32 %v778_v44 }
 0x222   :  { %v784_v46 = vpop.xlane.xlu1 %783 }
 0x223   :  { %v787_v47 = vpop.xlane.xlu0 %786 }
 0x224   :  { %v1756_v48 = vpop.eup %1755  ;;  %1765 = vrcp.f32 %v787_v47 }
 0x225   :  { %1767 = vrcp.f32 %v784_v46  ;;  %v1998_v49 = vmul.f32 %v1756_v48, %v1740_v23 }
 0x226   :  { %v790_v50 = vpop.xlane.xlu1 %789 }
 0x227   :  { %808 = vrot.lane.b32.xlu0 %v1998_v49, %s1882_s21  ;;  %1769 = vrcp.f32 %v790_v50  ;;  %v77_v50 = vld [vmem:[#allocation7 + $0x10] sm:$0xff] }
 0x228   :  { %v1758_v51 = vpop.eup %1757 }
 0x229   :  { %v2002_v52 = vmul.f32 %v1758_v51, %v1742_v26  ;;  %v1760_v53 = vpop.eup %1759 }
 0x22a   :  { %v2006_v55 = vmul.f32 %v1760_v53, %v1744_v28 }
 0x22b   :  { %811 = vrot.lane.b32.xlu1 %v2002_v52, %s1882_s21 }
 0x22d   :  { %v1762_v54 = vpop.eup %1761 }
 0x22e   :  { %v1764_v56 = vpop.eup %1763  ;;  %v2008_v57 = vmul.f32 %v1762_v54, %v1748_v32 }
 0x22f   :  { %814 = vrot.lane.b32.xlu1 %v2006_v55, %s1882_s21  ;;  %v2014_v59 = vmul.f32 %v1764_v56, %v1746_v31 }
 0x230   :  { %820 = vrot.lane.b32.xlu0 %v2008_v57, %s1882_s21 }
 0x231   :  { %v1766_v58 = vpop.eup %1765 }
 0x232   :  { %v1768_v60 = vpop.eup %1767  ;;  %v2016_v61 = vmul.f32 %v1766_v58, %v1752_v36 }
 0x233   :  { %817 = vrot.lane.b32.xlu1 %v2014_v59, %s1882_s21  ;;  %v2022_v62 = vmul.f32 %v1768_v60, %v1750_v35  ;;  %v78_v60 = vld [vmem:[#allocation7 + $0x18] sm:$0xff] }
 0x234   :  { %826 = vrot.lane.b32.xlu0 %v2016_v61, %s1882_s21  ;;  %v1770_v63 = vpop.eup %1769 }
 0x235   :  { %v2026_v1 = vmul.f32 %v1770_v63, %v1754_v39 }
 0x237   :  { %823 = vrot.lane.b32.xlu1 %v2022_v62, %s1882_s21 }
 0x23b   :  { %829 = vrot.lane.b32.xlu1 %v2026_v1, %s1882_s21 }
 0x299   :  { %v809_v2 = vpop.permute.xlu0 %808 }
 0x29a   :  { %v810_v3 = vsel %vm807_vm3, %v809_v2, %v1998_v49 }
 0x29b   :  { %832 = vrot.lane.b32.xlu0 %v810_v3, %s1882_s21 }
 0x29d   :  { %v812_v4 = vpop.permute.xlu1 %811 }
 0x29e   :  { %v813_v5 = vsel %vm807_vm3, %v812_v4, %v2002_v52 }
 0x29f   :  { %834 = vrot.lane.b32.xlu1 %v813_v5, %s1882_s21 }
 0x2a1   :  { %v815_v6 = vpop.permute.xlu1 %814 }
 0x2a2   :  { %v821_v7 = vpop.permute.xlu0 %820  ;;  %v816_v8 = vsel %vm807_vm3, %v815_v6, %v2006_v55 }
 0x2a3   :  { %836 = vrot.lane.b32.xlu0 %v816_v8, %s1882_s21  ;;  %v822_v11 = vsel %vm807_vm3, %v821_v7, %v2008_v57  ;;  %v79_v7 = vld [vmem:[#allocation7 + $0x20] sm:$0xff] }
 0x2a5   :  { %v818_v9 = vpop.permute.xlu1 %817 }
 0x2a6   :  { %v819_v10 = vsel %vm807_vm3, %v818_v9, %v2014_v59  ;;  %v827_v12 = vpop.permute.xlu0 %826 }
 0x2a7   :  { %838 = vrot.lane.b32.xlu1 %v819_v10, %s1882_s21  ;;  %840 = vrot.lane.b32.xlu0 %v822_v11, %s1882_s21  ;;  %v828_v15 = vsel %vm807_vm3, %v827_v12, %v2016_v61 }
 0x2a9   :  { %v824_v13 = vpop.permute.xlu1 %823 }
 0x2aa   :  { %v825_v14 = vsel %vm807_vm3, %v824_v13, %v2022_v62 }
 0x2ab   :  { %842 = vrot.lane.b32.xlu1 %v825_v14, %s1882_s21  ;;  %844 = vrot.lane.b32.xlu0 %v828_v15, %s1882_s21  ;;  %v80_v14 = vld [vmem:[#allocation7 + $0x28] sm:$0xff] }
 0x2ad   :  { %v830_v16 = vpop.permute.xlu1 %829 }
 0x2ae   :  { %v831_v17 = vsel %vm807_vm3, %v830_v16, %v2026_v1 }
 0x2af   :  { %846 = vrot.lane.b32.xlu1 %v831_v17, %s1882_s21 }
 0x30d   :  { %v833_v19 = vpop.permute.xlu0 %832 }
 0x30e   :  { %v848_v20 = vsel %vm807_vm3, %v833_v19, %v1998_v49 }
 0x30f   :  { %867 = vrot.lane.b32.xlu0 %v848_v20, %s1886_s0 }
 0x311   :  { %v835_v22 = vpop.permute.xlu1 %834 }
 0x312   :  { %v849_v23 = vsel %vm807_vm3, %v835_v22, %v2002_v52 }
 0x313   :  { %869 = vrot.lane.b32.xlu1 %v849_v23, %s1886_s0  ;;  %910 = vrot.lane.b32.xlu0 %v848_v20, %s1887_s2 }
 0x315   :  { %v837_v24 = vpop.permute.xlu0 %836 }
 0x316   :  { %v850_v25 = vsel %vm807_vm3, %v837_v24, %v2006_v55 }
 0x317   :  { %912 = vrot.lane.b32.xlu1 %v849_v23, %s1887_s2  ;;  %871 = vrot.lane.b32.xlu0 %v850_v25, %s1886_s0 }
 0x319   :  { %v839_v26 = vpop.permute.xlu1 %838  ;;  %v841_v29 = vpop.permute.xlu0 %840 }
 0x31a   :  { %v851_v28 = vsel %vm807_vm3, %v839_v26, %v2014_v59  ;;  %v852_v30 = vsel %vm807_vm3, %v841_v29, %v2008_v57  ;;  %v82_v29 = vld [vmem:[#allocation7 + $0x38] sm:$0xff] }
 0x31b   :  { %873 = vrot.lane.b32.xlu1 %v851_v28, %s1886_s0  ;;  %914 = vrot.lane.b32.xlu0 %v850_v25, %s1887_s2 }
 0x31d   :  { %v843_v31 = vpop.permute.xlu1 %842  ;;  %v845_v33 = vpop.permute.xlu0 %844 }
 0x31e   :  { %v853_v32 = vsel %vm807_vm3, %v843_v31, %v2022_v62  ;;  %v854_v34 = vsel %vm807_vm3, %v845_v33, %v2016_v61 }
 0x31f   :  { %916 = vrot.lane.b32.xlu1 %v851_v28, %s1887_s2  ;;  %875 = vrot.lane.b32.xlu0 %v852_v30, %s1886_s0 }
 0x321   :  { %v847_v35 = vpop.permute.xlu1 %846 }
 0x322   :  { %v855_v36 = vsel %vm807_vm3, %v847_v35, %v2026_v1 }
 0x323   :  { %877 = vrot.lane.b32.xlu1 %v853_v32, %s1886_s0  ;;  %918 = vrot.lane.b32.xlu0 %v852_v30, %s1887_s2 }
 0x327   :  { %920 = vrot.lane.b32.xlu1 %v853_v32, %s1887_s2  ;;  %879 = vrot.lane.b32.xlu0 %v854_v34, %s1886_s0 }
 0x32b   :  { %881 = vrot.lane.b32.xlu1 %v855_v36, %s1886_s0  ;;  %922 = vrot.lane.b32.xlu0 %v854_v34, %s1887_s2 }
 0x32f   :  { %924 = vrot.lane.b32.xlu1 %v855_v36, %s1887_s2 }
 0x381   :  { %v868_v37 = vpop.permute.xlu0 %867 }
 0x382   :  { %v891_v38 = vsel %vm856_vm4, %v868_v37, 0.0 }
 0x383   :  { %v899_v39 = vadd.f32 %v891_v38, %v1998_v49 }
 0x385   :  { %v870_v40 = vpop.permute.xlu1 %869  ;;  %v911_v41 = vpop.permute.xlu0 %910 }
 0x386   :  { %v892_v42 = vsel %vm856_vm4, %v870_v40, 0.0  ;;  %v934_v43 = vsel %vm907_vm5, %v911_v41, 0.0 }
 0x387   :  { %v942_v44 = vadd.f32 %v934_v43, %v899_v39  ;;  %v900_v45 = vadd.f32 %v892_v42, %v2002_v52 }
 0x389   :  { %v950_v46 = vmul.f32 0.33333334, %v942_v44  ;;  %v913_v47 = vpop.permute.xlu1 %912  ;;  %v872_v48 = vpop.permute.xlu0 %871 }
 0x38a   :  { %v935_v51 = vsel %vm907_vm5, %v913_v47, 0.0  ;;  %v893_v49 = vsel %vm856_vm4, %v872_v48, 0.0 }
 0x38b   :  { %958 = vst.msk [vmem:[#allocation9] sm:$0xff] %vm718_vm2, %v950_v46  ;;  %v943_v53 = vadd.f32 %v935_v51, %v900_v45  ;;  %1691 = vmatmul.mubr.msk.f32.vlgmr.msra.gmra.mxu0 %vm718_vm2, %v950_v46  ;;  %v901_v54 = vadd.f32 %v893_v49, %v2006_v55 }
 0x38c   :  { %1699 = vmatpush3.msra.mxu0 %v77_v50  ;;  %1700 = vmatprep.mubr.msk.f32.mxu0 %vm1885_vm0, %v1884_v0 }
 0x38d   :  { %v951_v52 = vmul.f32 0.33333334, %v943_v53  ;;  %v874_v56 = vpop.permute.xlu1 %873  ;;  %v915_v58 = vpop.permute.xlu0 %914  ;;  %1708 = vmatprep.subr.mxu0 %v1884_v0 }
 0x38e   :  { %v894_v63 = vsel %vm856_vm4, %v874_v56, 0.0  ;;  %v936_v2 = vsel %vm907_vm5, %v915_v58, 0.0 }
 0x38f   :  { %959 = vst.msk [vmem:[#allocation9 + $0x8] sm:$0xff] %vm718_vm2, %v951_v52  ;;  %v944_v3 = vadd.f32 %v936_v2, %v901_v54  ;;  %1696 = vmatmul.mubr.msk.f32.vlgmr.msra.gmra.mxu1 %vm718_vm2, %v951_v52  ;;  %v902_v55 = vadd.f32 %v894_v63, %v2014_v59 }
 0x390   :  { %1704 = vmatpush3.msra.mxu1 %v78_v60  ;;  %1705 = vmatprep.mubr.msk.f32.mxu1 %vm1885_vm0, %v1884_v0 }
 0x391   :  { %v952_v4 = vmul.f32 0.33333334, %v944_v3  ;;  %v917_v5 = vpop.permute.xlu1 %916  ;;  %v876_v6 = vpop.permute.xlu0 %875  ;;  %1713 = vmatprep.subr.mxu1 %v1884_v0 }
 0x392   :  { %v937_v8 = vsel %vm907_vm5, %v917_v5, 0.0  ;;  %v895_v9 = vsel %vm856_vm4, %v876_v6, 0.0 }
 0x393   :  { %960 = vst.msk [vmem:[#allocation9 + $0x10] sm:$0xff] %vm718_vm2, %v952_v4  ;;  %v945_v10 = vadd.f32 %v937_v8, %v902_v55  ;;  %1701 = vmatmul.mubr.msk.f32.vlgmr.msra.gmra.mxu0 %vm718_vm2, %v952_v4  ;;  %v903_v11 = vadd.f32 %v895_v9, %v2008_v57 }
 0x394   :  { %1709 = vmatpush3.msra.mxu0 %v79_v7  ;;  %1710 = vmatprep.mubr.msk.f32.mxu0 %vm1885_vm0, %v1884_v0 }
 0x395   :  { %v953_v59 = vmul.f32 0.33333334, %v945_v10  ;;  %v878_v12 = vpop.permute.xlu1 %877  ;;  %v919_v13 = vpop.permute.xlu0 %918  ;;  %1718 = vmatprep.subr.mxu0 %v1884_v0 }
 0x396   :  { %v896_v15 = vsel %vm856_vm4, %v878_v12, 0.0  ;;  %v938_v16 = vsel %vm907_vm5, %v919_v13, 0.0 }
 0x397   :  { %961 = vst.msk [vmem:[#allocation9 + $0x18] sm:$0xff] %vm718_vm2, %v953_v59  ;;  %v946_v17 = vadd.f32 %v938_v16, %v903_v11  ;;  %1706 = vmatmul.mubr.msk.f32.vlgmr.msra.gmra.mxu1 %vm718_vm2, %v953_v59  ;;  %v904_v57 = vadd.f32 %v896_v15, %v2022_v62 }
 0x398   :  { %1714 = vmatpush3.msra.mxu1 %v80_v14  ;;  %1715 = vmatprep.mubr.msk.f32.mxu1 %vm1885_vm0, %v1884_v0 }
 0x399   :  { %v954_v18 = vmul.f32 0.33333334, %v946_v17  ;;  %v921_v19 = vpop.permute.xlu1 %920  ;;  %v880_v20 = vpop.permute.xlu0 %879  ;;  %1723 = vmatprep.subr.mxu1 %v1884_v0 }
 0x39a   :  { %v939_v22 = vsel %vm907_vm5, %v921_v19, 0.0  ;;  %v897_v23 = vsel %vm856_vm4, %v880_v20, 0.0 }
 0x39b   :  { %962 = vst.msk [vmem:[#allocation9 + $0x20] sm:$0xff] %vm718_vm2, %v954_v18  ;;  %v947_v24 = vadd.f32 %v939_v22, %v904_v57  ;;  %1711 = vmatmul.mubr.msk.f32.vlgmr.msra.gmra.mxu0 %vm718_vm2, %v954_v18  ;;  %v905_v25 = vadd.f32 %v897_v23, %v2016_v61 }
 0x39c   :  { %1719 = vmatpush3.msra.mxu0 %v81_v21  ;;  %1720 = vmatprep.mubr.msk.f32.mxu0 %vm1885_vm0, %v1884_v0 }
 0x39d   :  { %v955_v62 = vmul.f32 0.33333334, %v947_v24  ;;  %v882_v26 = vpop.permute.xlu1 %881  ;;  %v923_v28 = vpop.permute.xlu0 %922 }
 0x39e   :  { %v898_v30 = vsel %vm856_vm4, %v882_v26, 0.0  ;;  %v940_v31 = vsel %vm907_vm5, %v923_v28, 0.0 }
 0x39f   :  { %963 = vst.msk [vmem:[#allocation9 + $0x28] sm:$0xff] %vm718_vm2, %v955_v62  ;;  %v948_v32 = vadd.f32 %v940_v31, %v905_v25  ;;  %1716 = vmatmul.mubr.msk.f32.vlgmr.msra.gmra.mxu1 %vm718_vm2, %v955_v62  ;;  %v906_v61 = vadd.f32 %v898_v30, %v2026_v1 }
 0x3a0   :  { %1724 = vmatpush3.msra.mxu1 %v82_v29  ;;  %1725 = vmatprep.mubr.msk.f32.mxu1 %vm1885_vm0, %v1884_v0 }
 0x3a1   :  { %v956_v33 = vmul.f32 0.33333334, %v948_v32  ;;  %v925_v34 = vpop.permute.xlu1 %924 }
 0x3a2   :  { %v941_v35 = vsel %vm907_vm5, %v925_v34, 0.0 }
 0x3a3   :  { %964 = vst.msk [vmem:[#allocation9 + $0x30] sm:$0xff] %vm718_vm2, %v956_v33  ;;  %v949_v36 = vadd.f32 %v941_v35, %v906_v61  ;;  %1721 = vmatmul.mubr.msk.f32.vlgmr.msra.gmra.mxu0 %vm718_vm2, %v956_v33 }
 0x3a5   :  { %v957_v37 = vmul.f32 0.33333334, %v949_v36 }
 0x3a7   :  { %965 = vst.msk [vmem:[#allocation9 + $0x38] sm:$0xff] %vm718_vm2, %v957_v37  ;;  %1726 = vmatmul.mubr.msk.f32.vlgmr.msra.gmra.mxu1 %vm718_vm2, %v957_v37 }
 0x3a8   :  { %1842 = shalt.err (!%p1839_p5)
}
 0x3a9   :  { %1581 = dma.vmem_to_hbm [thread:$0]  %s1576_s6, 1024, %s2178_s4, [#allocation10], %s1881_s20, %s1881_s20, %s1882_s21  }
 0x3aa   :  { %s1889_s4 = smov [#allocation8]  }
 0x3ab   :  { %s1563_s10 = sshll.u32 %s1889_s4, 4  ;;  %s1564_s10 = int_to_ptr.vmem [resolvable:$true] %s1563_s10 }
 0x3ac   :  { %s1851_s11 = scalar_lea.vmem %s1564_s10, 1024  ;;  %p1856_p7 = scmp.lt.s32.totalorder %s1564_s10, %s1564_s10 }
 0x3ad   :  { %p1852_p6 = scmp.ne.s32.totalorder %s1564_s10, %s1851_s11  ;;  %p1857_p8 = scmp.lt.s32.totalorder %s1851_s11, %s1851_s11 }
 0x3af   :  { %p1858_p9 = por %p1857_p8, %p1856_p7 }
 0x3b1   :  { %p1859_p10 = pnand %p1858_p9, %p1852_p6 }
 0x44b   :  { %v1035_v0 = vpop.f32.mrf.mxu0 }
 0x44c   :  { %1550 = vst.msk [vmem:[#allocation8] sm:$0xff] %vm91_vm1, %v1035_v0 }
 0x44d   :  { %v1692_v27 = vpop.f32.mrf.mxu0 }
 0x44f   :  { %v1108_v1 = vpop.f32.mrf.mxu1 }
 0x450   :  { %1551 = vst.msk [vmem:[#allocation8 + $0x8] sm:$0xff] %vm91_vm1, %v1108_v1 }
 0x451   :  { %v1697_v38 = vpop.f32.mrf.mxu1 }
 0x453   :  { %v1181_v39 = vpop.f32.mrf.mxu0 }
 0x454   :  { %1552 = vst.msk [vmem:[#allocation8 + $0x10] sm:$0xff] %vm91_vm1, %v1181_v39 }
 0x455   :  { %v1702_v40 = vpop.f32.mrf.mxu0 }
 0x457   :  { %v1254_v41 = vpop.f32.mrf.mxu1 }
 0x458   :  { %1553 = vst.msk [vmem:[#allocation8 + $0x18] sm:$0xff] %vm91_vm1, %v1254_v41 }
 0x459   :  { %v1707_v42 = vpop.f32.mrf.mxu1 }
 0x45b   :  { %v1327_v43 = vpop.f32.mrf.mxu0 }
 0x45c   :  { %1554 = vst.msk [vmem:[#allocation8 + $0x20] sm:$0xff] %vm91_vm1, %v1327_v43 }
 0x45d   :  { %v1712_v44 = vpop.f32.mrf.mxu0 }
 0x45f   :  { %v1400_v45 = vpop.f32.mrf.mxu1 }
 0x460   :  { %1555 = vst.msk [vmem:[#allocation8 + $0x28] sm:$0xff] %vm91_vm1, %v1400_v45 }
 0x461   :  { %v1717_v46 = vpop.f32.mrf.mxu1 }
 0x463   :  { %v1473_v47 = vpop.f32.mrf.mxu0 }
 0x464   :  { %1556 = vst.msk [vmem:[#allocation8 + $0x30] sm:$0xff] %vm91_vm1, %v1473_v47 }
 0x465   :  { %v1722_v48 = vpop.f32.mrf.mxu0 }
 0x467   :  { %v1546_v50 = vpop.f32.mrf.mxu1 }
 0x468   :  { %1557 = vst.msk [vmem:[#allocation8 + $0x38] sm:$0xff] %vm91_vm1, %v1546_v50 }
 0x469   :  { %v1727_v51 = vpop.f32.mrf.mxu1 }
 0x46a   :  { %1862 = shalt.err (!%p1859_p10)
}
 0x46b   :  { %1569 = dma.vmem_to_hbm [thread:$0]  %s1564_s10, 1024, %s2177_s3, [#allocation4], %s1881_s20, %s1881_s20, %s1882_s21  }
 0x46c   :  { %1875 = dma.done.wait [#allocation4], 1024  }
 0x46d   :  { %1876 = vsyncadd [#allocation4], 4294966272 }
 0x46e   :  { %1877 = dma.done.wait [#allocation10], 1024  }
 0x46f   :  { %1878 = vsyncadd [#allocation10], 4294966272 }
 0x470   :  { %1588 = vsyncpa [#allocation3], 1 }
 0x471   :  { %1589 = vsyncpa [#allocation6], 1 }
 0x472   :  { %1590 = vsyncpa [#allocation4], 1 }
 0x473   :  { %1591 = vsyncpa [#allocation10], 1 }

</bundles_post_ra>
